<compile_context>
chip_gen: v6e
topology: v6e:2x2x1
jax: 0.10.0
libtpu: 0.0.40
codegen_flags: <defaults>
</compile_context>

<pallas_src>
import math

import jax
import jax.numpy as jnp
from jax import lax
from jax.experimental import pallas as pl
from jax.experimental.pallas import tpu as pltpu

N_HEAD = 4
N_EMBED = 32
D_HEAD = N_EMBED // N_HEAD
SEQ = 8
BATCH = 2
EPS = 1e-5          # nn.LayerNorm default
LANES = 128         # lane width used for parameter-slab packing


def _layernorm(x, w, b):
    mu = jnp.mean(x, axis=-1, keepdims=True)
    var = jnp.mean((x - mu) ** 2, axis=-1, keepdims=True)
    return (x - mu) * lax.rsqrt(var + EPS) * w + b


def clip_layer_kernel(x_ref, w_ref, v_ref, out_ref):
    E = N_EMBED
    BS = x_ref.shape[0]                      # B * S (batch folded into rows)

    x = x_ref[...]                           # (BS, E) f32

    # ---- unpack packed parameter slabs (static slices) ----
    wqkv = w_ref[0:E, 0:3 * E]               # (E, 3E)
    wo = w_ref[0:E, 3 * E:4 * E]             # (E, E)
    w1 = w_ref[E:2 * E, 0:4 * E]             # (E, 4E)
    w2t = w_ref[2 * E:3 * E, 0:4 * E]        # (E, 4E)  == w2.T

    ln1_w = v_ref[0:1, 0:E]
    ln1_b = v_ref[1:2, 0:E]
    bqkv = v_ref[2:3, 0:3 * E]
    bo = v_ref[3:4, 0:E]
    ln2_w = v_ref[4:5, 0:E]
    ln2_b = v_ref[5:6, 0:E]
    b1 = v_ref[6:7, 0:4 * E]
    b2 = v_ref[7:8, 0:E]

    resid = x

    # ---- LayerNorm 1 ----
    xn = _layernorm(x, ln1_w, ln1_b)

    # ---- QKV projection over all batch rows at once ----
    qkv = jnp.dot(xn, wqkv, preferred_element_type=jnp.float32) + bqkv
    # fold 1/sqrt(d_head) into q (the -inf mask below is scale-invariant, so
    # this matches the reference mask-before-scale order exactly)
    q = qkv[:, 0:E] * jnp.float32(1.0 / math.sqrt(D_HEAD))
    k = qkv[:, E:2 * E]
    v = qkv[:, 2 * E:3 * E]

    # ---- head-major operands (H, BS, D); heads batched into one contraction ----
    qh = jnp.stack([q[:, h * D_HEAD:(h + 1) * D_HEAD] for h in range(N_HEAD)], axis=0)
    kh = jnp.stack([k[:, h * D_HEAD:(h + 1) * D_HEAD] for h in range(N_HEAD)], axis=0)
    vh = jnp.stack([v[:, h * D_HEAD:(h + 1) * D_HEAD] for h in range(N_HEAD)], axis=0)

    scores = jnp.einsum("hqd,hkd->hqk", qh, kh,
                        preferred_element_type=jnp.float32)      # (H, BS, BS)

    # causal mask within each sequence; no attention across batch elements.
    # Built once at (BS, BS), broadcast over heads.
    row = lax.broadcasted_iota(jnp.int32, (BS, BS), 0)
    col = lax.broadcasted_iota(jnp.int32, (BS, BS), 1)
    if SEQ & (SEQ - 1) == 0:                 # power-of-two: cheap shift
        shift = SEQ.bit_length() - 1
        row_b = jnp.right_shift(row, shift)
        col_b = jnp.right_shift(col, shift)
    else:
        row_b = row // SEQ
        col_b = col // SEQ
    masked = (col > row) | (row_b != col_b)
    scores = jnp.where(masked[None, :, :], -jnp.inf, scores)

    # batched softmax (diagonal is always unmasked -> no empty rows)
    scores = scores - jnp.max(scores, axis=-1, keepdims=True)
    p = jnp.exp(scores)
    p = p * pl.reciprocal(jnp.sum(p, axis=-1, keepdims=True), approx=True)

    oh = jnp.einsum("hqk,hkd->hqd", p, vh,
                    preferred_element_type=jnp.float32)          # (H, BS, D)
    attn = jnp.concatenate([oh[h] for h in range(N_HEAD)], axis=-1)  # (BS, E)

    x = jnp.dot(attn, wo, preferred_element_type=jnp.float32) + bo + resid
    resid = x

    # ---- LayerNorm 2 + MLP with QuickGELU ----
    xn = _layernorm(x, ln2_w, ln2_b)
    h1 = jnp.dot(xn, w1, preferred_element_type=jnp.float32) + b1
    h1 = h1 * jax.nn.sigmoid(jnp.float32(1.702) * h1)
    # w2 is stored transposed (E, 4E): contract the last dims (NT matmul).
    y = lax.dot_general(h1, w2t, (((1,), (1,)), ((), ())),
                        preferred_element_type=jnp.float32) + b2

    out_ref[...] = y + resid


def _pack_params(p):
    """Pack all weights into one lane-dense (3E, 128) slab and all 1-D params
    into an (8, 128) slab."""
    E = N_EMBED
    w_slab = jnp.zeros((3 * E, LANES), jnp.float32)
    w_slab = w_slab.at[0:E, 0:3 * E].set(p["wqkv"].astype(jnp.float32))
    w_slab = w_slab.at[0:E, 3 * E:4 * E].set(p["wo"].astype(jnp.float32))
    w_slab = w_slab.at[E:2 * E, 0:4 * E].set(p["w1"].astype(jnp.float32))
    w_slab = w_slab.at[2 * E:3 * E, 0:4 * E].set(p["w2"].T.astype(jnp.float32))

    def row(name):
        vec = p[name]
        return jnp.pad(vec, (0, LANES - vec.shape[0]))[None, :]

    v_slab = jnp.concatenate(
        [row("ln1_w"), row("ln1_b"), row("bqkv"), row("bo"),
         row("ln2_w"), row("ln2_b"), row("b1"), row("b2")],
        axis=0).astype(jnp.float32)          # (8, 128)

    return w_slab, v_slab


def clip_layer(x, params):
    B, S, E = x.shape
    assert E == N_EMBED and S == SEQ and E % N_HEAD == 0

    w_slab, v_slab = _pack_params(params)
    x2 = x.reshape(B * S, E).astype(jnp.float32)   # fold batch into rows (outside kernel)

    out2 = pl.pallas_call(
        clip_layer_kernel,
        out_shape=jax.ShapeDtypeStruct((B * S, E), jnp.float32),
        in_specs=[
            pl.BlockSpec(memory_space=pltpu.MemorySpace.VMEM),
            pl.BlockSpec(memory_space=pltpu.MemorySpace.VMEM),
            pl.BlockSpec(memory_space=pltpu.MemorySpace.VMEM),
        ],
        out_specs=pl.BlockSpec(memory_space=pltpu.MemorySpace.VMEM),
    )(x2, w_slab, v_slab)

    return out2.reshape(B, S, E)


def make_params(key):
    """Deterministic synthetic parameters. Linear weights stored as (in, out)."""
    ks = jax.random.split(key, 8)
    s = 0.05
    return {
        "ln1_w": jnp.ones((N_EMBED,), jnp.float32),
        "ln1_b": jnp.zeros((N_EMBED,), jnp.float32),
        "wqkv": jax.random.normal(ks[0], (N_EMBED, 3 * N_EMBED), jnp.float32) * s,
        "bqkv": jax.random.normal(ks[1], (3 * N_EMBED,), jnp.float32) * s,
        "wo":   jax.random.normal(ks[2], (N_EMBED, N_EMBED), jnp.float32) * s,
        "bo":   jax.random.normal(ks[3], (N_EMBED,), jnp.float32) * s,
        "ln2_w": jnp.ones((N_EMBED,), jnp.float32),
        "ln2_b": jnp.zeros((N_EMBED,), jnp.float32),
        "w1":   jax.random.normal(ks[4], (N_EMBED, 4 * N_EMBED), jnp.float32) * s,
        "b1":   jax.random.normal(ks[5], (4 * N_EMBED,), jnp.float32) * s,
        "w2":   jax.random.normal(ks[6], (4 * N_EMBED, N_EMBED), jnp.float32) * s,
        "b2":   jax.random.normal(ks[7], (N_EMBED,), jnp.float32) * s,
    }


def ref_forward(x, p):
    """Pure-JAX reference mirroring the PyTorch CLIPLayer forward."""
    B, S, E = x.shape

    def ln(v, w, b):
        mu = v.mean(-1, keepdims=True)
        var = ((v - mu) ** 2).mean(-1, keepdims=True)
        return (v - mu) / jnp.sqrt(var + EPS) * w + b

    resid = x
    xn = ln(x, p["ln1_w"], p["ln1_b"])
    qkv = xn @ p["wqkv"] + p["bqkv"]
    q, k, v = jnp.split(qkv, 3, axis=-1)

    def to_heads(t):
        return t.reshape(B, S, N_HEAD, D_HEAD).transpose(0, 2, 1, 3)

    q, k, v = to_heads(q), to_heads(k), to_heads(v)
    scores = jnp.einsum("bhqd,bhkd->bhqk", q, k)
    mask = jnp.triu(jnp.ones((S, S), bool), 1)
    scores = jnp.where(mask, -jnp.inf, scores) / math.sqrt(D_HEAD)
    attn = jax.nn.softmax(scores, axis=-1)
    o = jnp.einsum("bhqk,bhkd->bhqd", attn, v).transpose(0, 2, 1, 3).reshape(B, S, E)
    o = o @ p["wo"] + p["bo"]
    x = o + resid

    resid = x
    xn = ln(x, p["ln2_w"], p["ln2_b"])
    h = xn @ p["w1"] + p["b1"]
    h = h * jax.nn.sigmoid(1.702 * h)
    y = h @ p["w2"] + p["b2"]
    return y + resid


if __name__ == "__main__":
    key = jax.random.PRNGKey(0)
    kx, kp = jax.random.split(key)
    x = jax.random.normal(kx, (BATCH, SEQ, N_EMBED), jnp.float32)
    params = make_params(kp)

    out = jax.block_until_ready(clip_layer(x, params))
    expected = jax.block_until_ready(ref_forward(x, params))

    assert out.shape == (BATCH, SEQ, N_EMBED)
    # Slightly looser tolerance than strict 1e-4 to cover the EUP approximate
    # reciprocal used in the softmax normalization; everything else is f32.
    assert jnp.allclose(out, expected, atol=2e-4, rtol=2e-4), "mismatch vs reference"

    print("KERNEL_OK")
</pallas_src>

<mosaic_0001>
module attributes {stable_mosaic.version = 11 : i64} {
  func.func @clip_layer_kernel(%arg0: memref<16x32xf32, #tpu.memory_space<vmem>>, %arg1: memref<96x128xf32, #tpu.memory_space<vmem>>, %arg2: memref<8x128xf32, #tpu.memory_space<vmem>>, %arg3: memref<16x32xf32, #tpu.memory_space<vmem>>) attributes {dimension_semantics = [], scalar_prefetch = 0 : i64, scratch_operands = 0 : i64, tpu.core_type = #tpu.core_type<tc>} {
    %c0 = arith.constant 0 : index
    %c0_0 = arith.constant 0 : index
    %0 = vector.load %arg0[%c0, %c0_0] : memref<16x32xf32, #tpu.memory_space<vmem>>, vector<16x32xf32>
    %c0_1 = arith.constant 0 : index
    %c0_2 = arith.constant 0 : index
    %1 = vector.load %arg1[%c0_1, %c0_2] : memref<96x128xf32, #tpu.memory_space<vmem>>, vector<32x96xf32>
    %c0_3 = arith.constant 0 : index
    %c96 = arith.constant 96 : index
    %2 = vector.load %arg1[%c0_3, %c96] : memref<96x128xf32, #tpu.memory_space<vmem>>, vector<32x32xf32>
    %c32 = arith.constant 32 : index
    %c0_4 = arith.constant 0 : index
    %3 = vector.load %arg1[%c32, %c0_4] : memref<96x128xf32, #tpu.memory_space<vmem>>, vector<32x128xf32>
    %c64 = arith.constant 64 : index
    %c0_5 = arith.constant 0 : index
    %4 = vector.load %arg1[%c64, %c0_5] : memref<96x128xf32, #tpu.memory_space<vmem>>, vector<32x128xf32>
    %c0_6 = arith.constant 0 : index
    %c0_7 = arith.constant 0 : index
    %5 = vector.load %arg2[%c0_6, %c0_7] : memref<8x128xf32, #tpu.memory_space<vmem>>, vector<1x32xf32>
    %c1 = arith.constant 1 : index
    %c0_8 = arith.constant 0 : index
    %6 = vector.load %arg2[%c1, %c0_8] : memref<8x128xf32, #tpu.memory_space<vmem>>, vector<1x32xf32>
    %c2 = arith.constant 2 : index
    %c0_9 = arith.constant 0 : index
    %7 = vector.load %arg2[%c2, %c0_9] : memref<8x128xf32, #tpu.memory_space<vmem>>, vector<1x96xf32>
    %c3 = arith.constant 3 : index
    %c0_10 = arith.constant 0 : index
    %8 = vector.load %arg2[%c3, %c0_10] : memref<8x128xf32, #tpu.memory_space<vmem>>, vector<1x32xf32>
    %c4 = arith.constant 4 : index
    %c0_11 = arith.constant 0 : index
    %9 = vector.load %arg2[%c4, %c0_11] : memref<8x128xf32, #tpu.memory_space<vmem>>, vector<1x32xf32>
    %c5 = arith.constant 5 : index
    %c0_12 = arith.constant 0 : index
    %10 = vector.load %arg2[%c5, %c0_12] : memref<8x128xf32, #tpu.memory_space<vmem>>, vector<1x32xf32>
    %c6 = arith.constant 6 : index
    %c0_13 = arith.constant 0 : index
    %11 = vector.load %arg2[%c6, %c0_13] : memref<8x128xf32, #tpu.memory_space<vmem>>, vector<1x128xf32>
    %c7 = arith.constant 7 : index
    %c0_14 = arith.constant 0 : index
    %12 = vector.load %arg2[%c7, %c0_14] : memref<8x128xf32, #tpu.memory_space<vmem>>, vector<1x32xf32>
    %cst = arith.constant dense<0.000000e+00> : vector<16xf32>
    %13 = vector.multi_reduction <add>, %0, %cst [1] : vector<16x32xf32> to vector<16xf32>
    %14 = vector.shape_cast %13 : vector<16xf32> to vector<16x1xf32>
    %cst_15 = arith.constant 3.200000e+01 : f32
    %15 = vector.broadcast %cst_15 : f32 to vector<16x1xf32>
    %16 = arith.divf %14, %15 : vector<16x1xf32>
    %17 = vector.broadcast %16 : vector<16x1xf32> to vector<16x32xf32>
    %18 = arith.subf %0, %17 : vector<16x32xf32>
    %19 = arith.mulf %18, %18 : vector<16x32xf32>
    %cst_16 = arith.constant dense<0.000000e+00> : vector<16xf32>
    %20 = vector.multi_reduction <add>, %19, %cst_16 [1] : vector<16x32xf32> to vector<16xf32>
    %21 = vector.shape_cast %20 : vector<16xf32> to vector<16x1xf32>
    %cst_17 = arith.constant 3.200000e+01 : f32
    %22 = vector.broadcast %cst_17 : f32 to vector<16x1xf32>
    %23 = arith.divf %21, %22 : vector<16x1xf32>
    %24 = vector.broadcast %16 : vector<16x1xf32> to vector<16x32xf32>
    %25 = arith.subf %0, %24 : vector<16x32xf32>
    %cst_18 = arith.constant 9.99999974E-6 : f32
    %26 = vector.broadcast %cst_18 : f32 to vector<16x1xf32>
    %27 = arith.addf %23, %26 : vector<16x1xf32>
    %28 = math.rsqrt %27 : vector<16x1xf32>
    %29 = vector.broadcast %28 : vector<16x1xf32> to vector<16x32xf32>
    %30 = arith.mulf %25, %29 : vector<16x32xf32>
    %31 = vector.broadcast %5 : vector<1x32xf32> to vector<16x32xf32>
    %32 = arith.mulf %30, %31 : vector<16x32xf32>
    %33 = vector.broadcast %6 : vector<1x32xf32> to vector<16x32xf32>
    %34 = arith.addf %32, %33 : vector<16x32xf32>
    %cst_19 = arith.constant dense<0.000000e+00> : vector<16x96xf32>
    %35 = tpu.matmul %34, %1, %cst_19 {dimension_numbers = #tpu.dot_dimension_numbers<[1], [0], [0], [1], [0, 0, 1, 1], [], []>} : vector<16x32xf32>, vector<32x96xf32>, vector<16x96xf32> -> vector<16x96xf32>
    %36 = vector.broadcast %7 : vector<1x96xf32> to vector<16x96xf32>
    %37 = arith.addf %35, %36 : vector<16x96xf32>
    %38 = vector.extract_strided_slice %37 {offsets = [0, 0], sizes = [16, 32], strides = [1, 1]} : vector<16x96xf32> to vector<16x32xf32>
    %cst_20 = arith.constant 0.353553385 : f32
    %39 = vector.broadcast %cst_20 : f32 to vector<16x32xf32>
    %40 = arith.mulf %38, %39 : vector<16x32xf32>
    %41 = vector.extract_strided_slice %37 {offsets = [0, 32], sizes = [16, 32], strides = [1, 1]} : vector<16x96xf32> to vector<16x32xf32>
    %42 = vector.extract_strided_slice %37 {offsets = [0, 64], sizes = [16, 32], strides = [1, 1]} : vector<16x96xf32> to vector<16x32xf32>
    %43 = vector.extract_strided_slice %40 {offsets = [0, 0], sizes = [16, 8], strides = [1, 1]} : vector<16x32xf32> to vector<16x8xf32>
    %44 = vector.extract_strided_slice %40 {offsets = [0, 8], sizes = [16, 8], strides = [1, 1]} : vector<16x32xf32> to vector<16x8xf32>
    %45 = vector.extract_strided_slice %40 {offsets = [0, 16], sizes = [16, 8], strides = [1, 1]} : vector<16x32xf32> to vector<16x8xf32>
    %46 = vector.extract_strided_slice %40 {offsets = [0, 24], sizes = [16, 8], strides = [1, 1]} : vector<16x32xf32> to vector<16x8xf32>
    %47 = vector.shape_cast %43 : vector<16x8xf32> to vector<1x16x8xf32>
    %48 = vector.shape_cast %44 : vector<16x8xf32> to vector<1x16x8xf32>
    %49 = vector.shape_cast %45 : vector<16x8xf32> to vector<1x16x8xf32>
    %50 = vector.shape_cast %46 : vector<16x8xf32> to vector<1x16x8xf32>
    %51 = tpu.concatenate %47, %48, %49, %50 in 0 : vector<1x16x8xf32>, vector<1x16x8xf32>, vector<1x16x8xf32>, vector<1x16x8xf32> -> vector<4x16x8xf32>
    %52 = vector.extract_strided_slice %41 {offsets = [0, 0], sizes = [16, 8], strides = [1, 1]} : vector<16x32xf32> to vector<16x8xf32>
    %53 = vector.extract_strided_slice %41 {offsets = [0, 8], sizes = [16, 8], strides = [1, 1]} : vector<16x32xf32> to vector<16x8xf32>
    %54 = vector.extract_strided_slice %41 {offsets = [0, 16], sizes = [16, 8], strides = [1, 1]} : vector<16x32xf32> to vector<16x8xf32>
    %55 = vector.extract_strided_slice %41 {offsets = [0, 24], sizes = [16, 8], strides = [1, 1]} : vector<16x32xf32> to vector<16x8xf32>
    %56 = vector.shape_cast %52 : vector<16x8xf32> to vector<1x16x8xf32>
    %57 = vector.shape_cast %53 : vector<16x8xf32> to vector<1x16x8xf32>
    %58 = vector.shape_cast %54 : vector<16x8xf32> to vector<1x16x8xf32>
    %59 = vector.shape_cast %55 : vector<16x8xf32> to vector<1x16x8xf32>
    %60 = tpu.concatenate %56, %57, %58, %59 in 0 : vector<1x16x8xf32>, vector<1x16x8xf32>, vector<1x16x8xf32>, vector<1x16x8xf32> -> vector<4x16x8xf32>
    %61 = vector.extract_strided_slice %42 {offsets = [0, 0], sizes = [16, 8], strides = [1, 1]} : vector<16x32xf32> to vector<16x8xf32>
    %62 = vector.extract_strided_slice %42 {offsets = [0, 8], sizes = [16, 8], strides = [1, 1]} : vector<16x32xf32> to vector<16x8xf32>
    %63 = vector.extract_strided_slice %42 {offsets = [0, 16], sizes = [16, 8], strides = [1, 1]} : vector<16x32xf32> to vector<16x8xf32>
    %64 = vector.extract_strided_slice %42 {offsets = [0, 24], sizes = [16, 8], strides = [1, 1]} : vector<16x32xf32> to vector<16x8xf32>
    %65 = vector.shape_cast %61 : vector<16x8xf32> to vector<1x16x8xf32>
    %66 = vector.shape_cast %62 : vector<16x8xf32> to vector<1x16x8xf32>
    %67 = vector.shape_cast %63 : vector<16x8xf32> to vector<1x16x8xf32>
    %68 = vector.shape_cast %64 : vector<16x8xf32> to vector<1x16x8xf32>
    %69 = tpu.concatenate %65, %66, %67, %68 in 0 : vector<1x16x8xf32>, vector<1x16x8xf32>, vector<1x16x8xf32>, vector<1x16x8xf32> -> vector<4x16x8xf32>
    "tpu.trace_start"() <{level = 10 : i32, message = "hqd,hkd->hqk"}> : () -> ()
    %cst_21 = arith.constant dense<0.000000e+00> : vector<4x16x16xf32>
    %70 = tpu.matmul %51, %60, %cst_21 {dimension_numbers = #tpu.dot_dimension_numbers<[2], [2], [1], [1], [0, 0, 0, 1, 1, 1], [0], [0]>} : vector<4x16x8xf32>, vector<4x16x8xf32>, vector<4x16x16xf32> -> vector<4x16x16xf32>
    "tpu.trace_stop"() : () -> ()
    %71 = tpu.iota {dimensions = array<i32: 0>} : vector<16x16xi32>
    %72 = tpu.iota {dimensions = array<i32: 1>} : vector<16x16xi32>
    %c3_i32 = arith.constant 3 : i32
    %73 = vector.broadcast %c3_i32 : i32 to vector<16x16xi32>
    %74 = arith.shrsi %71, %73 : vector<16x16xi32>
    %c3_i32_22 = arith.constant 3 : i32
    %75 = vector.broadcast %c3_i32_22 : i32 to vector<16x16xi32>
    %76 = arith.shrsi %72, %75 : vector<16x16xi32>
    %77 = arith.cmpi sgt, %72, %71 : vector<16x16xi32>
    %78 = arith.cmpi ne, %74, %76 : vector<16x16xi32>
    %79 = arith.ori %77, %78 : vector<16x16xi1>
    %80 = vector.shape_cast %79 : vector<16x16xi1> to vector<1x16x16xi1>
    %cst_23 = arith.constant 0xFF800000 : f32
    %81 = vector.shape_cast %80 : vector<1x16x16xi1> to vector<1x16x16xi1>
    %82 = vector.broadcast %81 : vector<1x16x16xi1> to vector<4x16x16xi1>
    %83 = vector.broadcast %cst_23 : f32 to vector<4x16x16xf32>
    %84 = arith.select %82, %83, %70 : vector<4x16x16xi1>, vector<4x16x16xf32>
    %cst_24 = arith.constant dense<0xFF800000> : vector<4x16xf32>
    %85 = vector.multi_reduction <maximumf>, %84, %cst_24 [2] : vector<4x16x16xf32> to vector<4x16xf32>
    %86 = vector.shape_cast %85 : vector<4x16xf32> to vector<4x16x1xf32>
    %87 = vector.broadcast %86 : vector<4x16x1xf32> to vector<4x16x16xf32>
    %88 = arith.subf %84, %87 : vector<4x16x16xf32>
    %89 = math.exp %88 : vector<4x16x16xf32>
    %cst_25 = arith.constant dense<0.000000e+00> : vector<4x16xf32>
    %90 = vector.multi_reduction <add>, %89, %cst_25 [2] : vector<4x16x16xf32> to vector<4x16xf32>
    %91 = vector.shape_cast %90 : vector<4x16xf32> to vector<4x16x1xf32>
    %92 = tpu.reciprocal %91 {approx = true} : vector<4x16x1xf32> -> vector<4x16x1xf32>
    %93 = vector.broadcast %92 : vector<4x16x1xf32> to vector<4x16x16xf32>
    %94 = arith.mulf %89, %93 : vector<4x16x16xf32>
    "tpu.trace_start"() <{level = 10 : i32, message = "hqk,hkd->hqd"}> : () -> ()
    %cst_26 = arith.constant dense<0.000000e+00> : vector<4x16x8xf32>
    %95 = tpu.matmul %94, %69, %cst_26 {dimension_numbers = #tpu.dot_dimension_numbers<[2], [1], [1], [2], [0, 0, 0, 1, 1, 2], [0], [0]>} : vector<4x16x16xf32>, vector<4x16x8xf32>, vector<4x16x8xf32> -> vector<4x16x8xf32>
    "tpu.trace_stop"() : () -> ()
    %96 = vector.extract_strided_slice %95 {offsets = [0, 0, 0], sizes = [1, 16, 8], strides = [1, 1, 1]} : vector<4x16x8xf32> to vector<1x16x8xf32>
    %97 = vector.shape_cast %96 : vector<1x16x8xf32> to vector<16x8xf32>
    %98 = vector.extract_strided_slice %95 {offsets = [1, 0, 0], sizes = [1, 16, 8], strides = [1, 1, 1]} : vector<4x16x8xf32> to vector<1x16x8xf32>
    %99 = vector.shape_cast %98 : vector<1x16x8xf32> to vector<16x8xf32>
    %100 = vector.extract_strided_slice %95 {offsets = [2, 0, 0], sizes = [1, 16, 8], strides = [1, 1, 1]} : vector<4x16x8xf32> to vector<1x16x8xf32>
    %101 = vector.shape_cast %100 : vector<1x16x8xf32> to vector<16x8xf32>
    %102 = vector.extract_strided_slice %95 {offsets = [3, 0, 0], sizes = [1, 16, 8], strides = [1, 1, 1]} : vector<4x16x8xf32> to vector<1x16x8xf32>
    %103 = vector.shape_cast %102 : vector<1x16x8xf32> to vector<16x8xf32>
    %104 = tpu.concatenate %97, %99, %101, %103 in 1 : vector<16x8xf32>, vector<16x8xf32>, vector<16x8xf32>, vector<16x8xf32> -> vector<16x32xf32>
    %cst_27 = arith.constant dense<0.000000e+00> : vector<16x32xf32>
    %105 = tpu.matmul %104, %2, %cst_27 {dimension_numbers = #tpu.dot_dimension_numbers<[1], [0], [0], [1], [0, 0, 1, 1], [], []>} : vector<16x32xf32>, vector<32x32xf32>, vector<16x32xf32> -> vector<16x32xf32>
    %106 = vector.broadcast %8 : vector<1x32xf32> to vector<16x32xf32>
    %107 = arith.addf %105, %106 : vector<16x32xf32>
    %108 = arith.addf %107, %0 : vector<16x32xf32>
    %cst_28 = arith.constant dense<0.000000e+00> : vector<16xf32>
    %109 = vector.multi_reduction <add>, %108, %cst_28 [1] : vector<16x32xf32> to vector<16xf32>
    %110 = vector.shape_cast %109 : vector<16xf32> to vector<16x1xf32>
    %cst_29 = arith.constant 3.200000e+01 : f32
    %111 = vector.broadcast %cst_29 : f32 to vector<16x1xf32>
    %112 = arith.divf %110, %111 : vector<16x1xf32>
    %113 = vector.broadcast %112 : vector<16x1xf32> to vector<16x32xf32>
    %114 = arith.subf %108, %113 : vector<16x32xf32>
    %115 = arith.mulf %114, %114 : vector<16x32xf32>
    %cst_30 = arith.constant dense<0.000000e+00> : vector<16xf32>
    %116 = vector.multi_reduction <add>, %115, %cst_30 [1] : vector<16x32xf32> to vector<16xf32>
    %117 = vector.shape_cast %116 : vector<16xf32> to vector<16x1xf32>
    %cst_31 = arith.constant 3.200000e+01 : f32
    %118 = vector.broadcast %cst_31 : f32 to vector<16x1xf32>
    %119 = arith.divf %117, %118 : vector<16x1xf32>
    %120 = vector.broadcast %112 : vector<16x1xf32> to vector<16x32xf32>
    %121 = arith.subf %108, %120 : vector<16x32xf32>
    %cst_32 = arith.constant 9.99999974E-6 : f32
    %122 = vector.broadcast %cst_32 : f32 to vector<16x1xf32>
    %123 = arith.addf %119, %122 : vector<16x1xf32>
    %124 = math.rsqrt %123 : vector<16x1xf32>
    %125 = vector.broadcast %124 : vector<16x1xf32> to vector<16x32xf32>
    %126 = arith.mulf %121, %125 : vector<16x32xf32>
    %127 = vector.broadcast %9 : vector<1x32xf32> to vector<16x32xf32>
    %128 = arith.mulf %126, %127 : vector<16x32xf32>
    %129 = vector.broadcast %10 : vector<1x32xf32> to vector<16x32xf32>
    %130 = arith.addf %128, %129 : vector<16x32xf32>
    %cst_33 = arith.constant dense<0.000000e+00> : vector<16x128xf32>
    %131 = tpu.matmul %130, %3, %cst_33 {dimension_numbers = #tpu.dot_dimension_numbers<[1], [0], [0], [1], [0, 0, 1, 1], [], []>} : vector<16x32xf32>, vector<32x128xf32>, vector<16x128xf32> -> vector<16x128xf32>
    %132 = vector.broadcast %11 : vector<1x128xf32> to vector<16x128xf32>
    %133 = arith.addf %131, %132 : vector<16x128xf32>
    %cst_34 = arith.constant 1.702000e+00 : f32
    %134 = vector.broadcast %cst_34 : f32 to vector<16x128xf32>
    %135 = arith.mulf %134, %133 : vector<16x128xf32>
    %136 = arith.negf %135 : vector<16x128xf32>
    %137 = math.exp %136 : vector<16x128xf32>
    %cst_35 = arith.constant 1.000000e+00 : f32
    %138 = vector.broadcast %cst_35 : f32 to vector<16x128xf32>
    %139 = arith.addf %138, %137 : vector<16x128xf32>
    %140 = arith.divf %138, %139 : vector<16x128xf32>
    %141 = arith.mulf %133, %140 : vector<16x128xf32>
    %cst_36 = arith.constant dense<0.000000e+00> : vector<16x32xf32>
    %142 = tpu.matmul %141, %4, %cst_36 {dimension_numbers = #tpu.dot_dimension_numbers<[1], [1], [0], [0], [0, 0, 1, 0], [], []>} : vector<16x128xf32>, vector<32x128xf32>, vector<16x32xf32> -> vector<16x32xf32>
    %143 = vector.broadcast %12 : vector<1x32xf32> to vector<16x32xf32>
    %144 = arith.addf %142, %143 : vector<16x32xf32>
    %145 = arith.addf %144, %108 : vector<16x32xf32>
    %c0_37 = arith.constant 0 : index
    %c0_38 = arith.constant 0 : index
    %146 = vector.load %arg3[%c0_37, %c0_38] : memref<16x32xf32, #tpu.memory_space<vmem>>, vector<16x32xf32>
    tpu.vector_store %arg3[%c0_37, %c0_38], %145 {strides = array<i32>} : memref<16x32xf32, #tpu.memory_space<vmem>>, vector<16x32xf32>,
    return
  }
}

</mosaic_0001>

<bundles_post_ra>
// kernel: tpu_custom_call.1
= control target key start
LH: loop header
LB: loop body
LE: loop exit
PB: predicated region body
PF: predicated region fallthrough
CT: control target
= control target key end

     0   :  { %8 = vsyncpa [#allocation3], 0  ;;  %s2026_s0 = inlined_call_operand.hbm [shape: f32[16,32], index: 0, kind: input, shape index: {}]   ;;  %s2027_s1 = inlined_call_operand.hbm [shape: f32[96,128], index: 1, kind: input, shape index: {}]   ;;  %s2028_s2 = inlined_call_operand.hbm [shape: f32[8,128], index: 2, kind: input, shape index: {}]   ;;  %s2029_s3 = inlined_call_operand.hbm [shape: f32[16,32], index: 3, kind: output, shape index: {}]  }
   0x1   :  { %9 = vsyncpa [#allocation6], 0 }
   0x2   :  { %10 = vsyncpa [#allocation4], 0  ;;  %s1761_s12 = smov [#allocation5]   ;;  %s1762_s14 = smov [#allocation2]  }
   0x3   :  { %s28_s13 = sshll.u32 %s1761_s12, 4  ;;  %s16_s15 = sshll.u32 %s1762_s14, 4  ;;  %s29_s13 = int_to_ptr.vmem [resolvable:$true] %s28_s13  ;;  %s17_s15 = int_to_ptr.vmem [resolvable:$true] %s16_s15 }
   0x4   :  { %s1683_s16 = scalar_lea.vmem %s29_s13, 1536  ;;  %p1688_p1 = scmp.lt.s32.totalorder %s29_s13, %s29_s13 }
   0x5   :  { %p1684_p0 = scmp.ne.s32.totalorder %s29_s13, %s1683_s16  ;;  %p1689_p2 = scmp.lt.s32.totalorder %s1683_s16, %s1683_s16 }
   0x7   :  { %p1690_p3 = por %p1689_p2, %p1688_p1 }
   0x9   :  { %p1691_p4 = pnand %p1690_p3, %p1684_p0 }
   0xb   :  { %1694 = shalt.err (!%p1691_p4)
}
   0xc   :  { %s1763_s17 = smov 128   ;;  %s1764_s18 = smov 8  }
   0xd   :  { %34 = dma.hbm_to_vmem [thread:$0]  %s2027_s1, 1536, %s29_s13, [#allocation6], %s1763_s17, %s1763_s17, %s1764_s18  }
   0xe   :  { %s1703_s21 = scalar_lea.vmem %s17_s15, 256  ;;  %p1708_p6 = scmp.lt.s32.totalorder %s17_s15, %s17_s15 }
   0xf   :  { %p1704_p5 = scmp.ne.s32.totalorder %s17_s15, %s1703_s21  ;;  %p1709_p7 = scmp.lt.s32.totalorder %s1703_s21, %s1703_s21 }
  0x11   :  { %p1710_p8 = por %p1709_p7, %p1708_p6 }
  0x13   :  { %p1711_p9 = pnand %p1710_p8, %p1704_p5 }
  0x15   :  { %1714 = shalt.err (!%p1711_p9)
}
  0x16   :  { %22 = dma.hbm_to_vmem [thread:$0]  %s2026_s0, 256, %s17_s15, [#allocation3], %s1763_s17, %s1763_s17, %s1764_s18  }
  0x17   :  { %s1765_s24 = smov [#allocation7]  }
  0x18   :  { %s41_s25 = sshll.u32 %s1765_s24, 4  ;;  %s42_s25 = int_to_ptr.vmem [resolvable:$true] %s41_s25 }
  0x19   :  { %s1723_s26 = scalar_lea.vmem %s42_s25, 128  ;;  %p1728_p11 = scmp.lt.s32.totalorder %s42_s25, %s42_s25 }
  0x1a   :  { %p1724_p10 = scmp.ne.s32.totalorder %s42_s25, %s1723_s26  ;;  %p1729_p12 = scmp.lt.s32.totalorder %s1723_s26, %s1723_s26 }
  0x1c   :  { %p1730_p13 = por %p1729_p12, %p1728_p11 }
  0x1e   :  { %p1731_p0 = pnand %p1730_p13, %p1724_p10 }
  0x20   :  { %1734 = shalt.err (!%p1731_p0)
}
  0x21   :  { %44 = dma.hbm_to_vmem [thread:$0]  %s2028_s2, 128, %s42_s25, [#allocation6]  }
  0x22   :  { %1755 = dma.done.wait [#allocation3], 256  }
  0x23   :  { %1756 = vsyncadd [#allocation3], 4294967040 }
  0x24   :  { %1757 = dma.done.wait [#allocation6], 1664  }
  0x25   :  { %1758 = vsyncadd [#allocation6], 4294965632  ;;  %vm76_vm0 = vcmask 261120   ;;  %v1810_v0 = vld [vmem:[#allocation2] sm:$0xff]  ;;  %v1812_v1 = vld [vmem:[#allocation2 + $0x8] sm:$0xff]  ;;  %s1766_s0 = smov 112   ;;  %v580_v61 = vlaneseq }
  0x26   :  { %v77_v2 = vsel %vm76_vm0, %v1810_v0, 0.0  ;;  %v80_v3 = vsel %vm76_vm0, %v1812_v1, 0.0  ;;  %v1822_v14 = vld [vmem:[#allocation5 + $0x18] sm:$0xff]  ;;  %v1824_v15 = vld [vmem:[#allocation5 + $0x10] sm:$0xff]  ;;  %v1828_v16 = vld [vmem:[#allocation5 + $0x8] sm:$0xff]  ;;  %s1767_s2 = smov 120  }
  0x27   :  { %78 = vadd.xlane.f32.xlu0 %v77_v2  ;;  %1513 = vmatprep.subr.mxu1 %v1822_v14  ;;  %v1834_v17 = vld [vmem:[#allocation5] sm:$0xff]  ;;  %vm235_vm1 = vcmask 64512   ;;  %s1768_s28 = smov 96   ;;  %s1769_s29 = smov 104   ;;  %v581_v62 = vshrl.u32 %v580_v61, 7  ;;  %v584_v2 = vand.u32 127, %v580_v61 }
  0x28   :  { %1514 = vmatpush3.msra.mxu1 %v1822_v14  ;;  %v1417_v25 = vld [vmem:[#allocation7] ss:$0 sm:$0xff]  ;;  %v1418_v27 = vld [vmem:[#allocation7 + $0x1] ss:$0 sm:$0xff]  ;;  %v1419_v34 = vld [vmem:[#allocation7 + $0x2] ss:$0 sm:$0xff] }
  0x29   :  { %1515 = vmatprep.subr.mxu1 %v1824_v15  ;;  %v582_v63 = vadd.s32 8, %v581_v62  ;;  %vm588_vm4 = vcmp.gt.s32.totalorder %v584_v2, %v581_v62  ;;  %vm606_vm7 = vcmask 130048   ;;  %s1770_s30 = smov 64   ;;  %s1771_s4 = smov 32   ;;  %vm1071_vm9 = vcmask 195584  }
  0x2a   :  { %1516 = vmatpush3.msra.mxu1 %v1824_v15  ;;  %s1772_s5 = smov 16   ;;  %s1773_s6 = smov 24  }
  0x2b   :  { %81 = vadd.xlane.f32.xlu0 %v80_v3  ;;  %1517 = vmatprep.subr.mxu1 %v1828_v16  ;;  %v586_v3 = vshra.s32 %v582_v63, 3  ;;  %vm589_vm2 = vcmp.gt.s32.totalorder %v584_v2, %v582_v63  ;;  %s1774_s7 = smov [#allocation8]  }
  0x2c   :  { %1518 = vmatpush3.msra.mxu1 %v1828_v16  ;;  %s1404_s8 = sshll.u32 %s1774_s7, 4  ;;  %s1405_s8 = int_to_ptr.vmem [resolvable:$true] %s1404_s8 }
  0x2d   :  { %1519 = vmatprep.subr.mxu1 %v1834_v17  ;;  %s1735_s9 = scalar_lea.vmem %s1405_s8, 256  ;;  %p1740_p2 = scmp.lt.s32.totalorder %s1405_s8, %s1405_s8 }
  0x2e   :  { %1520 = vmatpush3.msra.mxu1 %v1834_v17  ;;  %p1736_p1 = scmp.ne.s32.totalorder %s1405_s8, %s1735_s9  ;;  %p1741_p3 = scmp.lt.s32.totalorder %s1735_s9, %s1735_s9 }
  0x30   :  { %p1742_p4 = por %p1741_p3, %p1740_p2 }
  0x32   :  { %p1743_p5 = pnand %p1742_p4, %p1736_p1 }
  0xb0   :  { %v79_v4 = vpop.xlane.xlu0 %78 }
  0xb1   :  { %v84_v5 = vmul.f32 0.03125, %v79_v4  ;;  %v587_v4 = vshra.s32 %v584_v2, 3 }
  0xb3   :  { %v86_v6 = vsub.f32 %v1810_v0, %v84_v5  ;;  %v585_v5 = vshra.s32 %v581_v62, 3  ;;  %vm591_vm3 = vcmp.ne.s32.totalorder %v586_v3, %v587_v4 }
  0xb4   :  { %v82_v7 = vpop.xlane.xlu0 %81  ;;  %vm1904_vm6 = vmor %vm589_vm2, %vm591_vm3 }
  0xb5   :  { %v85_v8 = vmul.f32 0.03125, %v82_v7  ;;  %v88_v9 = vmul.f32 %v86_v6, %v86_v6  ;;  %vm590_vm5 = vcmp.ne.s32.totalorder %v585_v5, %v587_v4 }
  0xb6   :  { %vm1908_vm8 = vmor %vm588_vm4, %vm590_vm5 }
  0xb7   :  { %v87_v10 = vsub.f32 %v1812_v1, %v85_v8  ;;  %v90_v11 = vsel %vm76_vm0, %v88_v9, 0.0 }
  0xb8   :  { %91 = vadd.xlane.f32.xlu1 %v90_v11 }
  0xb9   :  { %v89_v12 = vmul.f32 %v87_v10, %v87_v10 }
  0xbb   :  { %v93_v13 = vsel %vm76_vm0, %v89_v12, 0.0 }
  0xbc   :  { %94 = vadd.xlane.f32.xlu1 %v93_v13 }
 0x141   :  { %v92_v18 = vpop.xlane.xlu1 %91 }
 0x142   :  { %v96_v19 = vmul.f32 0.03125, %v92_v18 }
 0x144   :  { %v98_v20 = vadd.f32 1e-05, %v96_v19 }
 0x145   :  { %v95_v21 = vpop.xlane.xlu1 %94 }
 0x146   :  { %1627 = vrsqrt.f32 %v98_v20  ;;  %v97_v22 = vmul.f32 0.03125, %v95_v21 }
 0x148   :  { %v99_v23 = vadd.f32 1e-05, %v97_v22 }
 0x14a   :  { %1629 = vrsqrt.f32 %v99_v23 }
 0x153   :  { %v1628_v24 = vpop.eup %1627 }
 0x154   :  { %v102_v26 = vmul.f32 %v1628_v24, %v86_v6 }
 0x156   :  { %v108_v28 = vmul.f32 %v1417_v25, %v102_v26 }
 0x157   :  { %v1630_v29 = vpop.eup %1629 }
 0x158   :  { %v103_v30 = vmul.f32 %v1630_v29, %v87_v10  ;;  %v114_v31 = vadd.f32 %v1418_v27, %v108_v28 }
 0x15a   :  { %v109_v32 = vmul.f32 %v1417_v25, %v103_v30  ;;  %1521 = vmatprep.mubr.msk.f32.mxu1 %vm76_vm0, %v114_v31 }
 0x15c   :  { %v115_v33 = vadd.f32 %v1418_v27, %v109_v32 }
 0x15e   :  { %1522 = vmatmul.mubr.msk.f32.vlgmr.msra.gmra.mxu1 %vm76_vm0, %v115_v33 }
 0x21e   :  { %v1523_v35 = vpop.f32.mrf.mxu1 }
 0x21f   :  { %v1840_v36 = vadd.f32 %v1523_v35, %v1419_v34 }
 0x220   :  { %v192_v37 = vpop.f32.mrf.mxu1 }
 0x221   :  { %v1842_v38 = vadd.f32 %v1419_v34, %v192_v37  ;;  %225 = vrot.lane.b32.xlu1 %v1840_v36, %s1766_s0  ;;  %221 = vrot.lane.b32.xlu0 %v1840_v36, %s1767_s2  ;;  %v202_v40 = vmul.f32 0.35355338, %v1840_v36 }
 0x223   :  { %v201_v39 = vmul.f32 0.35355338, %v1842_v38 }
 0x225   :  { %223 = vrot.lane.b32.xlu0 %v1842_v38, %s1766_s0  ;;  %219 = vrot.lane.b32.xlu1 %v1842_v38, %s1767_s2 }
 0x226   :  { %1528 = vmatprep.mubr.msk.f32.mxu1 %vm235_vm1, %v201_v39 }
 0x229   :  { %233 = vrot.lane.b32.xlu0 %v1840_v36, %s1768_s28  ;;  %229 = vrot.lane.b32.xlu1 %v1840_v36, %s1769_s29 }
 0x22d   :  { %231 = vrot.lane.b32.xlu0 %v1842_v38, %s1768_s28  ;;  %227 = vrot.lane.b32.xlu1 %v1842_v38, %s1769_s29 }
 0x231   :  { %207 = vrot.lane.b32.xlu1 %v202_v40, %s1767_s2  ;;  %209 = vrot.lane.b32.xlu0 %v201_v39, %s1766_s0 }
 0x235   :  { %205 = vrot.lane.b32.xlu1 %v201_v39, %s1767_s2 }
 0x293   :  { %v1860_v41 = vpop.permute.xlu1 %225  ;;  %v1862_v42 = vpop.permute.xlu0 %221 }
 0x294   :  { %408 = vrot.lane.b32.xlu0 %v1860_v41, %s1768_s28  ;;  %321 = vrot.lane.b32.xlu1 %v1862_v42, %s1768_s28 }
 0x297   :  { %v1866_v43 = vpop.permute.xlu0 %223  ;;  %v1868_v44 = vpop.permute.xlu1 %219 }
 0x298   :  { %319 = vrot.lane.b32.xlu1 %v1868_v44, %s1768_s28 }
 0x29b   :  { %v234_v45 = vpop.permute.xlu0 %233  ;;  %v1871_v46 = vpop.permute.xlu1 %229 }
 0x29c   :  { %1524 = vmatprep.subr.msk.mxu1 %vm235_vm1, %v234_v45  ;;  %495 = vrot.lane.b32.xlu0 %v1871_v46, %s1768_s28 }
 0x29d   :  { %211 = vrot.lane.b32.xlu1 %v202_v40, %s1766_s0  ;;  %1525 = vmatpush3.xpose.msk.msra.mxu1 %vm235_vm1, %v234_v45 }
 0x29f   :  { %v232_v47 = vpop.permute.xlu0 %231  ;;  %v1877_v48 = vpop.permute.xlu1 %227 }
 0x2a0   :  { %1526 = vmatprep.subr.msk.mxu1 %vm235_vm1, %v232_v47  ;;  %406 = vrot.lane.b32.xlu0 %v1866_v43, %s1768_s28 }
 0x2a1   :  { %493 = vrot.lane.b32.xlu1 %v1877_v48, %s1768_s28  ;;  %1527 = vmatpush3.xpose.msk.msra.mxu1 %vm235_vm1, %v232_v47 }
 0x2a3   :  { %v208_v49 = vpop.permute.xlu1 %207  ;;  %v210_v50 = vpop.permute.xlu0 %209 }
 0x2a4   :  { %213 = vrot.lane.b32.xlu0 %v201_v39, %s1769_s29  ;;  %1529 = vmatmul.mubr.msk.f32.vlgmr.msra.gmra.mxu1 %vm235_vm1, %v202_v40 }
 0x2a5   :  { %215 = vrot.lane.b32.xlu1 %v202_v40, %s1769_s29  ;;  %1542 = vmatprep.mubr.msk.f32.mxu1 %vm235_vm1, %v210_v50 }
 0x2a7   :  { %v206_v51 = vpop.permute.xlu1 %205 }
 0x2a8   :  { %1535 = vmatprep.mubr.msk.f32.mxu0 %vm235_vm1, %v206_v51 }
 0x306   :  { %v409_v52 = vpop.permute.xlu0 %408  ;;  %v322_v53 = vpop.permute.xlu1 %321 }
 0x307   :  { %1531 = vmatprep.subr.msk.mxu0 %vm235_vm1, %v322_v53  ;;  %1538 = vmatprep.subr.msk.mxu1 %vm235_vm1, %v409_v52 }
 0x308   :  { %1532 = vmatpush3.xpose.msk.msra.mxu0 %vm235_vm1, %v322_v53  ;;  %1539 = vmatpush3.xpose.msk.msra.mxu1 %vm235_vm1, %v409_v52 }
 0x30a   :  { %v320_v54 = vpop.permute.xlu1 %319 }
 0x30b   :  { %1533 = vmatprep.subr.msk.mxu0 %vm235_vm1, %v320_v54 }
 0x30c   :  { %1534 = vmatpush3.xpose.msk.msra.mxu0 %vm235_vm1, %v320_v54 }
 0x30e   :  { %v496_v55 = vpop.permute.xlu0 %495 }
 0x30f   :  { %v212_v56 = vpop.permute.xlu1 %211  ;;  %1536 = vmatmul.mubr.msk.f32.vlgmr.msra.gmra.mxu0 %vm235_vm1, %v208_v49  ;;  %1545 = vmatprep.subr.msk.mxu0 %vm235_vm1, %v496_v55 }
 0x310   :  { %1546 = vmatpush3.xpose.msk.msra.mxu0 %vm235_vm1, %v496_v55 }
 0x312   :  { %v407_v57 = vpop.permute.xlu0 %406 }
 0x313   :  { %v494_v58 = vpop.permute.xlu1 %493  ;;  %1540 = vmatprep.subr.msk.mxu1 %vm235_vm1, %v407_v57 }
 0x314   :  { %1547 = vmatprep.subr.msk.mxu0 %vm235_vm1, %v494_v58  ;;  %1541 = vmatpush3.xpose.msk.msra.mxu1 %vm235_vm1, %v407_v57 }
 0x315   :  { %1548 = vmatpush3.xpose.msk.msra.mxu0 %vm235_vm1, %v494_v58 }
 0x316   :  { %v214_v59 = vpop.permute.xlu0 %213 }
 0x317   :  { %v216_v60 = vpop.permute.xlu1 %215  ;;  %1543 = vmatmul.mubr.msk.f32.vlgmr.msra.gmra.mxu1 %vm235_vm1, %v212_v56  ;;  %1549 = vmatprep.mubr.msk.f32.mxu0 %vm235_vm1, %v214_v59 }
 0x318   :  { %1550 = vmatmul.mubr.msk.f32.vlgmr.msra.gmra.mxu0 %vm235_vm1, %v216_v60 }
 0x364   :  { %v1530_v7 = vpop.f32.mrf.mxu1 }
 0x365   :  { %v599_v9 = vsel %vm1904_vm6, -inf, %v1530_v7 }
 0x366   :  { %v310_v10 = vpop.f32.mrf.mxu1  ;;  %v610_v11 = vsel %vm606_vm7, %v599_v9, -inf }
 0x367   :  { %v598_v12 = vsel %vm1908_vm8, -inf, %v310_v10  ;;  %611 = vmax.xlane.f32.xlu1 %v610_v11 }
 0x368   :  { %v607_v13 = vsel %vm606_vm7, %v598_v12, -inf }
 0x369   :  { %608 = vmax.xlane.f32.xlu0 %v607_v13 }
 0x3cf   :  { %v1537_v18 = vpop.f32.mrf.mxu0 }
 0x3d0   :  { %v601_v19 = vsel %vm1904_vm6, -inf, %v1537_v18 }
 0x3d1   :  { %v397_v20 = vpop.f32.mrf.mxu0  ;;  %v616_v21 = vsel %vm606_vm7, %v601_v19, -inf }
 0x3d2   :  { %v600_v22 = vsel %vm1908_vm8, -inf, %v397_v20  ;;  %617 = vmax.xlane.f32.xlu0 %v616_v21 }
 0x3d3   :  { %v613_v23 = vsel %vm606_vm7, %v600_v22, -inf }
 0x3d6   :  { %614 = vmax.xlane.f32.xlu0 %v613_v23 }
 0x3d7   :  { %v1544_v24 = vpop.f32.mrf.mxu1 }
 0x3d8   :  { %v603_v25 = vsel %vm1904_vm6, -inf, %v1544_v24  ;;  %v1551_v26 = vpop.f32.mrf.mxu0 }
 0x3d9   :  { %v484_v27 = vpop.f32.mrf.mxu1  ;;  %v622_v28 = vsel %vm606_vm7, %v603_v25, -inf  ;;  %v605_v29 = vsel %vm1904_vm6, -inf, %v1551_v26 }
 0x3da   :  { %v602_v30 = vsel %vm1908_vm8, -inf, %v484_v27  ;;  %v571_v31 = vpop.f32.mrf.mxu0  ;;  %623 = vmax.xlane.f32.xlu1 %v622_v28  ;;  %v628_v34 = vsel %vm606_vm7, %v605_v29, -inf }
 0x3db   :  { %v619_v32 = vsel %vm606_vm7, %v602_v30, -inf  ;;  %v604_v33 = vsel %vm1908_vm8, -inf, %v571_v31 }
 0x3dc   :  { %620 = vmax.xlane.f32.xlu0 %v619_v32  ;;  %v625_v35 = vsel %vm606_vm7, %v604_v33, -inf }
 0x3de   :  { %629 = vmax.xlane.f32.xlu1 %v628_v34 }
 0x3e0   :  { %626 = vmax.xlane.f32.xlu0 %v625_v35 }
 0x3ef   :  { %695 = vrot.lane.b32.xlu1 %v1842_v38, %s1770_s30 }
 0x3f0   :  { %v612_v40 = vpop.xlane.xlu1 %611 }
 0x3f1   :  { %v632_v38 = vsub.f32 %v599_v9, %v612_v40 }
 0x3f2   :  { %v609_v37 = vpop.xlane.xlu0 %608 }
 0x3f3   :  { %784 = vrot.lane.b32.xlu1 %v1862_v42, %s1770_s30  ;;  %v631_v39 = vsub.f32 %v598_v12, %v609_v37  ;;  %v641_v47 = vmul.f32 1.442695, %v632_v38 }
 0x3f5   :  { %v639_v45 = vmul.f32 1.442695, %v631_v39 }
 0x3f6   :  { %697 = vrot.lane.b32.xlu0 %v1840_v36, %s1770_s30 }
 0x3f7   :  { %782 = vrot.lane.b32.xlu1 %v1868_v44, %s1770_s30  ;;  %1631 = vpow2.f32 %v639_v45 }
 0x3f8   :  { %1633 = vpow2.f32 %v641_v47 }
 0x3fa   :  { %871 = vrot.lane.b32.xlu0 %v1860_v41, %s1770_s30 }
 0x3fb   :  { %958 = vrot.lane.b32.xlu1 %v1871_v46, %s1770_s30 }
 0x404   :  { %v1948_v42 = vpop.eup %1631 }
 0x405   :  { %v655_v36 = vsel %vm606_vm7, %v1948_v42, 0.0  ;;  %v1952_v44 = vpop.eup %1633 }
 0x406   :  { %v658_v41 = vsel %vm606_vm7, %v1952_v44, 0.0 }
 0x419   :  { %656 = vadd.xlane.f32.xlu0 %v655_v36 }
 0x41f   :  { %659 = vadd.xlane.f32.xlu1 %v658_v41 }
 0x45b   :  { %v618_v46 = vpop.xlane.xlu0 %617 }
 0x45c   :  { %v634_v49 = vsub.f32 %v601_v19, %v618_v46 }
 0x45e   :  { %v645_v50 = vmul.f32 1.442695, %v634_v49 }
 0x45f   :  { %v615_v51 = vpop.xlane.xlu0 %614 }
 0x460   :  { %1635 = vpow2.f32 %v645_v50  ;;  %v633_v52 = vsub.f32 %v600_v22, %v615_v51 }
 0x462   :  { %v643_v53 = vmul.f32 1.442695, %v633_v52 }
 0x463   :  { %v624_v54 = vpop.xlane.xlu1 %623 }
 0x464   :  { %1637 = vpow2.f32 %v643_v53  ;;  %v636_v55 = vsub.f32 %v603_v25, %v624_v54 }
 0x465   :  { %v621_v56 = vpop.xlane.xlu0 %620 }
 0x466   :  { %v649_v57 = vmul.f32 1.442695, %v636_v55  ;;  %v635_v58 = vsub.f32 %v602_v30, %v621_v56 }
 0x467   :  { %v630_v59 = vpop.xlane.xlu1 %629 }
 0x468   :  { %1639 = vpow2.f32 %v649_v57  ;;  %v647_v60 = vmul.f32 1.442695, %v635_v58  ;;  %v638_v61 = vsub.f32 %v605_v29, %v630_v59 }
 0x469   :  { %v627_v62 = vpop.xlane.xlu0 %626 }
 0x46a   :  { %1641 = vpow2.f32 %v647_v60  ;;  %v653_v63 = vmul.f32 1.442695, %v638_v61  ;;  %v637_v2 = vsub.f32 %v604_v33, %v627_v62 }
 0x46b   :  { %v696_v3 = vpop.permute.xlu1 %695 }
 0x46c   :  { %1643 = vpow2.f32 %v653_v63  ;;  %v651_v4 = vmul.f32 1.442695, %v637_v2 }
 0x46d   :  { %v1956_v5 = vpop.eup %1635  ;;  %v698_v6 = vpop.permute.xlu0 %697 }
 0x46e   :  { %1645 = vpow2.f32 %v651_v4  ;;  %1552 = vmatprep.subr.mxu1 %v698_v6  ;;  %v664_v7 = vsel %vm606_vm7, %v1956_v5, 0.0 }
 0x46f   :  { %665 = vadd.xlane.f32.xlu1 %v664_v7  ;;  %1553 = vmatpush3.msra.mxu1 %v698_v6  ;;  %v785_v9 = vpop.permute.xlu1 %784 }
 0x470   :  { %1554 = vmatprep.subr.mxu1 %v696_v3 }
 0x471   :  { %v1638_v8 = vpop.eup %1637  ;;  %1555 = vmatpush3.msra.mxu1 %v696_v3  ;;  %v872_v10 = vpop.permute.xlu0 %871 }
 0x472   :  { %1559 = vmatprep.subr.mxu1 %v785_v9  ;;  %1566 = vmatprep.subr.mxu0 %v872_v10  ;;  %v661_v11 = vsel %vm606_vm7, %v1638_v8, 0.0 }
 0x473   :  { %662 = vadd.xlane.f32.xlu0 %v661_v11  ;;  %1567 = vmatpush3.msra.mxu0 %v872_v10  ;;  %v783_v24 = vpop.permute.xlu1 %782  ;;  %v1446_v10 = vld [vmem:[#allocation7 + $0x3] ss:$0 sm:$0xff] }
 0x475   :  { %v1640_v12 = vpop.eup %1639 }
 0x476   :  { %v670_v13 = vsel %vm606_vm7, %v1640_v12, 0.0 }
 0x477   :  { %v1642_v18 = vpop.eup %1641  ;;  %671 = vadd.xlane.f32.xlu1 %v670_v13  ;;  %v959_v26 = vpop.permute.xlu1 %958 }
 0x478   :  { %v667_v19 = vsel %vm606_vm7, %v1642_v18, 0.0 }
 0x479   :  { %v1963_v20 = vpop.eup %1643  ;;  %668 = vadd.xlane.f32.xlu0 %v667_v19 }
 0x47a   :  { %v676_v21 = vsel %vm606_vm7, %v1963_v20, 0.0 }
 0x47b   :  { %v1646_v22 = vpop.eup %1645  ;;  %677 = vadd.xlane.f32.xlu1 %v676_v21 }
 0x47c   :  { %v673_v23 = vsel %vm606_vm7, %v1646_v22, 0.0 }
 0x47d   :  { %674 = vadd.xlane.f32.xlu0 %v673_v23 }
 0x48c   :  { %956 = vrot.lane.b32.xlu1 %v1877_v48, %s1770_s30 }
 0x490   :  { %1086 = vrot.lane.b32.xlu1 %v1824_v15, %s1771_s4 }
 0x493   :  { %869 = vrot.lane.b32.xlu0 %v1866_v43, %s1770_s30 }
 0x494   :  { %1084 = vrot.lane.b32.xlu1 %v1828_v16, %s1771_s4 }
 0x497   :  { %1088 = vrot.lane.b32.xlu0 %v1822_v14, %s1771_s4 }
 0x4a2   :  { %v657_v25 = vpop.xlane.xlu0 %656 }
 0x4a3   :  { %1647 = vrcp.f32 %v657_v25 }
 0x4a8   :  { %v660_v27 = vpop.xlane.xlu1 %659 }
 0x4a9   :  { %1649 = vrcp.f32 %v660_v27 }
 0x4b0   :  { %v1648_v28 = vpop.eup %1647 }
 0x4b1   :  { %v687_v29 = vmul.f32 %v1648_v28, %v1948_v42 }
 0x4b3   :  { %1556 = vmatprep.mubr.msk.f32.mxu1 %vm606_vm7, %v687_v29 }
 0x4b6   :  { %v1650_v30 = vpop.eup %1649 }
 0x4b7   :  { %v688_v31 = vmul.f32 %v1650_v30, %v1952_v44 }
 0x4b9   :  { %1557 = vmatmul.mubr.msk.f32.vlgmr.msra.gmra.mxu1 %vm606_vm7, %v688_v31  ;;  %v63_v31 = vld [vmem:[#allocation5 + $0x38] sm:$0xff] }
 0x4ba   :  { %1560 = vmatpush3.msra.mxu1 %v785_v9 }
 0x4bb   :  { %1561 = vmatprep.subr.mxu1 %v783_v24 }
 0x4bc   :  { %1562 = vmatpush3.msra.mxu1 %v783_v24 }
 0x4bd   :  { %1573 = vmatprep.subr.mxu1 %v959_v26 }
 0x4f8   :  { %v666_v43 = vpop.xlane.xlu1 %665 }
 0x4f9   :  { %1651 = vrcp.f32 %v666_v43  ;;  %v62_v43 = vld [vmem:[#allocation5 + $0x30] sm:$0xff] }
 0x4fc   :  { %v663_v48 = vpop.xlane.xlu0 %662 }
 0x4fd   :  { %1653 = vrcp.f32 %v663_v48  ;;  %v61_v48 = vld [vmem:[#allocation5 + $0x28] sm:$0xff] }
 0x500   :  { %v672_v32 = vpop.xlane.xlu1 %671 }
 0x501   :  { %1655 = vrcp.f32 %v672_v32  ;;  %v60_v32 = vld [vmem:[#allocation5 + $0x20] sm:$0xff] }
 0x502   :  { %v669_v33 = vpop.xlane.xlu0 %668 }
 0x503   :  { %1657 = vrcp.f32 %v669_v33 }
 0x504   :  { %v678_v34 = vpop.xlane.xlu1 %677 }
 0x505   :  { %1659 = vrcp.f32 %v678_v34 }
 0x506   :  { %v675_v35 = vpop.xlane.xlu0 %674  ;;  %v1652_v37 = vpop.eup %1651 }
 0x507   :  { %1661 = vrcp.f32 %v675_v35  ;;  %v690_v15 = vmul.f32 %v1652_v37, %v1956_v5 }
 0x508   :  { %v957_v45 = vpop.permute.xlu1 %956 }
 0x50a   :  { %v1654_v39 = vpop.eup %1653  ;;  %v870_v40 = vpop.permute.xlu0 %869 }
 0x50b   :  { %1568 = vmatprep.subr.mxu0 %v870_v40  ;;  %v689_v14 = vmul.f32 %v1654_v39, %v1638_v8 }
 0x50c   :  { %1569 = vmatpush3.msra.mxu0 %v870_v40  ;;  %v1087_v50 = vpop.permute.xlu1 %1086 }
 0x50d   :  { %1563 = vmatprep.mubr.msk.f32.mxu1 %vm606_vm7, %v689_v14 }
 0x50e   :  { %1564 = vmatmul.mubr.msk.f32.vlgmr.msra.gmra.mxu1 %vm606_vm7, %v690_v15  ;;  %v1656_v16 = vpop.eup %1655  ;;  %v1089_v49 = vpop.permute.xlu0 %1088  ;;  %v1449_v15 = vld [vmem:[#allocation7 + $0x4] ss:$0 sm:$0xff] }
 0x50f   :  { %1574 = vmatpush3.msra.mxu1 %v959_v26  ;;  %v692_v42 = vmul.f32 %v1656_v16, %v1640_v12  ;;  %1580 = vmatprep.subr.mxu0 %v1089_v49 }
 0x510   :  { %v1658_v38 = vpop.eup %1657  ;;  %1575 = vmatprep.subr.mxu1 %v957_v45  ;;  %v1085_v51 = vpop.permute.xlu1 %1084 }
 0x511   :  { %1576 = vmatpush3.msra.mxu1 %v957_v45  ;;  %v691_v47 = vmul.f32 %v1658_v38, %v1642_v18  ;;  %v1450_v45 = vld [vmem:[#allocation7 + $0x5] ss:$0 sm:$0xff] }
 0x512   :  { %v1660_v36 = vpop.eup %1659  ;;  %1591 = vmatprep.subr.mxu1 %v63_v31 }
 0x513   :  { %1570 = vmatprep.mubr.msk.f32.mxu0 %vm606_vm7, %v691_v47  ;;  %v694_v46 = vmul.f32 %v1660_v36, %v1963_v20 }
 0x514   :  { %v1662_v44 = vpop.eup %1661  ;;  %1571 = vmatmul.mubr.msk.f32.vlgmr.msra.gmra.mxu0 %vm606_vm7, %v692_v42 }
 0x515   :  { %v693_v41 = vmul.f32 %v1662_v44, %v1646_v22  ;;  %1581 = vmatpush3.msra.mxu0 %v1089_v49  ;;  %v66_v49 = vld [vmem:[#allocation5 + $0x50] sm:$0xff] }
 0x516   :  { %1582 = vmatprep.subr.mxu0 %v1087_v50 }
 0x517   :  { %1577 = vmatprep.mubr.msk.f32.mxu1 %vm606_vm7, %v693_v41  ;;  %1583 = vmatpush3.msra.mxu0 %v1087_v50  ;;  %v65_v50 = vld [vmem:[#allocation5 + $0x48] sm:$0xff] }
 0x518   :  { %1578 = vmatmul.mubr.msk.f32.vlgmr.msra.gmra.mxu1 %vm606_vm7, %v694_v46  ;;  %1584 = vmatprep.subr.mxu0 %v1085_v51  ;;  %v67_v46 = vld [vmem:[#allocation5 + $0x58] sm:$0xff] }
 0x519   :  { %1585 = vmatpush3.msra.mxu0 %v1085_v51  ;;  %1592 = vmatpush3.msra.mxu1 %v63_v31  ;;  %v64_v51 = vld [vmem:[#allocation5 + $0x40] sm:$0xff] }
 0x51a   :  { %1593 = vmatprep.subr.mxu1 %v62_v43 }
 0x51b   :  { %1594 = vmatpush3.msra.mxu1 %v62_v43 }
 0x51c   :  { %1595 = vmatprep.subr.mxu1 %v61_v48 }
 0x51d   :  { %1596 = vmatpush3.msra.mxu1 %v61_v48 }
 0x51e   :  { %1597 = vmatprep.subr.mxu1 %v60_v32 }
 0x51f   :  { %1598 = vmatpush3.msra.mxu1 %v60_v32 }
 0x579   :  { %v1558_v52 = vpop.f32.mrf.mxu1 }
 0x57b   :  { %v773_v53 = vpop.f32.mrf.mxu1 }
 0x5ce   :  { %v1565_v54 = vpop.f32.mrf.mxu1 }
 0x5cf   :  { %1047 = vrot.lane.b32.xlu0 %v1565_v54, %s1764_s18 }
 0x5d0   :  { %v860_v56 = vpop.f32.mrf.mxu1 }
 0x5d4   :  { %v1572_v55 = vpop.f32.mrf.mxu0 }
 0x5d5   :  { %1055 = vrot.lane.b32.xlu0 %v1572_v55, %s1772_s5 }
 0x5d6   :  { %v947_v57 = vpop.f32.mrf.mxu0 }
 0x5d7   :  { %1053 = vrot.lane.b32.xlu1 %v947_v57, %s1772_s5 }
 0x5d8   :  { %v1579_v58 = vpop.f32.mrf.mxu1 }
 0x5d9   :  { %1045 = vrot.lane.b32.xlu0 %v860_v56, %s1764_s18 }
 0x5da   :  { %v1034_v59 = vpop.f32.mrf.mxu1 }
 0x5db   :  { %1061 = vrot.lane.b32.xlu1 %v1034_v59, %s1773_s6 }
 0x5dd   :  { %1082 = vrot.lane.b32.xlu0 %v1834_v17, %s1771_s4 }
 0x5df   :  { %1063 = vrot.lane.b32.xlu1 %v1579_v58, %s1773_s6 }
 0x641   :  { %v1048_v60 = vpop.permute.xlu0 %1047 }
 0x642   :  { %v1068_v7 = vsel %vm235_vm1, %v1558_v52, %v1048_v60  ;;  %v1451_v52 = vld [vmem:[#allocation7 + $0x6] ss:$0 sm:$0xff] }
 0x647   :  { %v1056_v61 = vpop.permute.xlu0 %1055 }
 0x648   :  { %v1070_v17 = vsel %vm606_vm7, %v1068_v7, %v1056_v61  ;;  %v1456_v7 = vld [vmem:[#allocation7 + $0x7] ss:$0 sm:$0xff] }
 0x649   :  { %v1054_v62 = vpop.permute.xlu1 %1053 }
 0x64b   :  { %v1046_v63 = vpop.permute.xlu0 %1045 }
 0x64c   :  { %v1067_v2 = vsel %vm235_vm1, %v773_v53, %v1046_v63 }
 0x64d   :  { %v1062_v3 = vpop.permute.xlu1 %1061  ;;  %v1069_v4 = vsel %vm606_vm7, %v1067_v2, %v1054_v62 }
 0x64e   :  { %v1072_v5 = vsel %vm1071_vm9, %v1069_v4, %v1062_v3 }
 0x64f   :  { %1588 = vmatprep.mubr.msk.f32.mxu0 %vm76_vm0, %v1072_v5  ;;  %v1083_v6 = vpop.permute.xlu0 %1082 }
 0x650   :  { %1586 = vmatprep.subr.mxu0 %v1083_v6 }
 0x651   :  { %v1064_v8 = vpop.permute.xlu1 %1063  ;;  %1587 = vmatpush3.msra.mxu0 %v1083_v6 }
 0x652   :  { %v1073_v9 = vsel %vm1071_vm9, %v1070_v17, %v1064_v8  ;;  %1602 = vmatprep.subr.mxu0 %v67_v46 }
 0x653   :  { %1589 = vmatmul.mubr.msk.f32.vlgmr.msra.gmra.mxu0 %vm76_vm0, %v1073_v9 }
 0x654   :  { %1603 = vmatpush3.xpose.msra.mxu0 %v67_v46 }
 0x655   :  { %1604 = vmatprep.subr.mxu0 %v66_v49 }
 0x658   :  { %1605 = vmatpush3.xpose.msra.mxu0 %v66_v49 }
 0x659   :  { %1606 = vmatprep.subr.mxu0 %v65_v50 }
 0x65c   :  { %1607 = vmatpush3.xpose.msra.mxu0 %v65_v50 }
 0x65d   :  { %1608 = vmatprep.subr.mxu0 %v64_v51 }
 0x660   :  { %1609 = vmatpush3.xpose.msra.mxu0 %v64_v51 }
 0x713   :  { %v1590_v11 = vpop.f32.mrf.mxu0 }
 0x714   :  { %v1172_v12 = vadd.f32 %v1590_v11, %v1446_v10 }
 0x715   :  { %v1166_v13 = vpop.f32.mrf.mxu0 }
 0x716   :  { %v2001_v18 = vadd.f32 %v1172_v12, %v1812_v1  ;;  %v1167_v19 = vadd.f32 %v1446_v10, %v1166_v13 }
 0x718   :  { %v2004_v20 = vadd.f32 %v1167_v19, %v1810_v0  ;;  %v1180_v21 = vsel %vm76_vm0, %v2001_v18, 0.0 }
 0x719   :  { %1181 = vadd.xlane.f32.xlu1 %v1180_v21 }
 0x71a   :  { %v1177_v22 = vsel %vm76_vm0, %v2004_v20, 0.0 }
 0x71b   :  { %1178 = vadd.xlane.f32.xlu0 %v1177_v22 }
 0x7a2   :  { %v1182_v23 = vpop.xlane.xlu1 %1181 }
 0x7a3   :  { %v1184_v24 = vmul.f32 0.03125, %v1182_v23 }
 0x7a4   :  { %v1179_v25 = vpop.xlane.xlu0 %1178 }
 0x7a5   :  { %v1183_v26 = vmul.f32 0.03125, %v1179_v25  ;;  %v1186_v27 = vsub.f32 %v2001_v18, %v1184_v24 }
 0x7a7   :  { %v1185_v1 = vsub.f32 %v2004_v20, %v1183_v26  ;;  %v1188_v29 = vmul.f32 %v1186_v27, %v1186_v27 }
 0x7a9   :  { %v1187_v28 = vmul.f32 %v1185_v1, %v1185_v1  ;;  %v1192_v30 = vsel %vm76_vm0, %v1188_v29, 0.0 }
 0x7ab   :  { %v1189_v0 = vsel %vm76_vm0, %v1187_v28, 0.0 }
 0x7ac   :  { %1190 = vadd.xlane.f32.xlu0 %v1189_v0 }
 0x7b0   :  { %1193 = vadd.xlane.f32.xlu0 %v1192_v30 }
 0x835   :  { %v1191_v33 = vpop.xlane.xlu0 %1190 }
 0x836   :  { %v1195_v34 = vmul.f32 0.03125, %v1191_v33 }
 0x838   :  { %v1197_v35 = vadd.f32 1e-05, %v1195_v34 }
 0x839   :  { %v1194_v37 = vpop.xlane.xlu0 %1193 }
 0x83a   :  { %1663 = vrsqrt.f32 %v1197_v35  ;;  %v1196_v39 = vmul.f32 0.03125, %v1194_v37 }
 0x83c   :  { %v1198_v40 = vadd.f32 1e-05, %v1196_v39 }
 0x83e   :  { %1665 = vrsqrt.f32 %v1198_v40 }
 0x847   :  { %v1664_v14 = vpop.eup %1663 }
 0x848   :  { %v1201_v16 = vmul.f32 %v1664_v14, %v1185_v1 }
 0x84a   :  { %v1207_v38 = vmul.f32 %v1449_v15, %v1201_v16 }
 0x84b   :  { %v1666_v47 = vpop.eup %1665 }
 0x84c   :  { %v1202_v42 = vmul.f32 %v1666_v47, %v1186_v27  ;;  %v1213_v36 = vadd.f32 %v1450_v45, %v1207_v38 }
 0x84e   :  { %v1208_v44 = vmul.f32 %v1449_v15, %v1202_v42  ;;  %1599 = vmatprep.mubr.msk.f32.mxu1 %vm76_vm0, %v1213_v36 }
 0x850   :  { %v1214_v41 = vadd.f32 %v1450_v45, %v1208_v44 }
 0x852   :  { %1600 = vmatmul.mubr.msk.f32.vlgmr.msra.gmra.mxu1 %vm76_vm0, %v1214_v41 }
 0x912   :  { %v1601_v53 = vpop.f32.mrf.mxu1 }
 0x913   :  { %v1297_v54 = vadd.f32 %v1601_v53, %v1451_v52 }
 0x914   :  { %v1291_v55 = vpop.f32.mrf.mxu1 }
 0x915   :  { %v1455_v56 = vmul.f32 -1.702, %v1297_v54  ;;  %v1292_v57 = vadd.f32 %v1451_v52, %v1291_v55 }
 0x917   :  { %v1306_v58 = vmul.f32 1.442695, %v1455_v56  ;;  %v1454_v59 = vmul.f32 -1.702, %v1292_v57 }
 0x919   :  { %1667 = vpow2.f32 %v1306_v58  ;;  %v1304_v60 = vmul.f32 1.442695, %v1454_v59 }
 0x91b   :  { %1669 = vpow2.f32 %v1304_v60 }
 0x926   :  { %v1668_v61 = vpop.eup %1667 }
 0x927   :  { %v1309_v62 = vadd.f32 1.0, %v1668_v61 }
 0x928   :  { %v1670_v63 = vpop.eup %1669 }
 0x929   :  { %v1308_v2 = vadd.f32 1.0, %v1670_v63  ;;  %1671 = vrcp.f32 %v1309_v62 }
 0x92b   :  { %1673 = vrcp.f32 %v1308_v2 }
 0x936   :  { %v1672_v3 = vpop.eup %1671 }
 0x937   :  { %v1315_v6 = vmul.f32 %v1672_v3, %v1297_v54 }
 0x938   :  { %v1674_v4 = vpop.eup %1673 }
 0x939   :  { %v1314_v5 = vmul.f32 %v1674_v4, %v1292_v57 }
 0x93b   :  { %1610 = vmatprep.mubr.f32.mxu0 %v1314_v5 }
 0x93c   :  { %1611 = vmatmul.mubr.f32.vlgmr.msra.gmra.mxu0 %v1315_v6 }
 0x9fc   :  { %v1612_v17 = vpop.f32.mrf.mxu0 }
 0x9fd   :  { %v1392_v8 = vadd.f32 %v1612_v17, %v1456_v7 }
 0x9fe   :  { %v1386_v9 = vpop.f32.mrf.mxu0 }
 0x9ff   :  { %v1396_v10 = vadd.f32 %v1392_v8, %v2001_v18  ;;  %v1387_v11 = vadd.f32 %v1456_v7, %v1386_v9 }
 0xa01   :  { %1398 = vst.msk [vmem:[#allocation8 + $0x8] sm:$0xff] %vm76_vm0, %v1396_v10  ;;  %v1395_v12 = vadd.f32 %v1387_v11, %v2004_v20 }
 0xa03   :  { %1397 = vst.msk [vmem:[#allocation8] sm:$0xff] %vm76_vm0, %v1395_v12 }
 0xa04   :  { %1746 = shalt.err (!%p1743_p5)
}
 0xa05   :  { %1410 = dma.vmem_to_hbm [thread:$0]  %s1405_s8, 256, %s2029_s3, [#allocation4], %s1763_s17, %s1763_s17, %s1764_s18  }
 0xa06   :  { %1759 = dma.done.wait [#allocation4], 256  }
 0xa07   :  { %1760 = vsyncadd [#allocation4], 4294967040 }
 0xa08   :  { %1414 = vsyncpa [#allocation3], 1 }
 0xa09   :  { %1415 = vsyncpa [#allocation6], 1 }
 0xa0a   :  { %1416 = vsyncpa [#allocation4], 1 }

</bundles_post_ra>
